<compile_context>
chip_gen: v7x
topology: tpu7x:2x2x1
jax: 0.10.0
libtpu: 0.0.40
codegen_flags: <defaults>
</compile_context>

<pallas_src>
import jax
import jax.numpy as jnp
from jax.experimental import pallas as pl
from jax.experimental.pallas import tpu as pltpu

IN_DIM = 784
HID1 = 256
HID2 = 128
OUT_DIM = 10
OUT_PAD = 128          # lane-dense output width


def _cdiv(a, b):
    return (a + b - 1) // b


def _round_up(x, m):
    return (x + m - 1) // m * m


def _choose_tile_b(B):
    # Cap tile at 1024 rows (v6e HBM roofline / grid overhead amortization),
    # force an even step count >= 2 (both v7x TCs get balanced work), align
    # to 16 rows (bf16 sublane packing of the in-kernel cast).
    n_steps = _cdiv(B, 1024)
    if n_steps % 2:
        n_steps += 1
    n_steps = max(2, n_steps)
    return _round_up(_cdiv(B, n_steps), 16)


def fix_hidden_kernel(x_ref, w1_ref, b1_ref, wf_ref, w2_ref, b2_ref, o_ref):
    # x_ref: [tB, 784] f32 ; weights bf16 ; biases f32 ; o_ref: [tB, 128] f32
    x = x_ref[...].astype(jnp.bfloat16)          # cast in-kernel (VPU), no extra HBM pass

    # lin1 + ReLU (f32 accumulate, f32 elementwise)
    h1 = jnp.dot(x, w1_ref[...], preferred_element_type=jnp.float32) + b1_ref[...]
    h1 = jnp.maximum(h1, 0.0)

    # fixed (non-trainable) layer: h1 @ fix_layer + 0.005, then ReLU
    h2 = jnp.dot(h1.astype(jnp.bfloat16), wf_ref[...],
                 preferred_element_type=jnp.float32) + 0.005
    h2 = jnp.maximum(h2, 0.0)

    # lin2 (output padded to 128 lanes; pad bias = -1e30 -> exp ~ 0)
    logits = jnp.dot(h2.astype(jnp.bfloat16), w2_ref[...],
                     preferred_element_type=jnp.float32) + b2_ref[...]

    # numerically stable softmax over dim=1
    m = jnp.max(logits, axis=1, keepdims=True)
    e = jnp.exp(logits - m)
    denom = jnp.sum(e, axis=1, keepdims=True)
    o_ref[...] = (e * pl.reciprocal(denom, approx=True)).astype(o_ref.dtype)


def fix_hidden_forward(x, w1, b1, wf, w2, b2):
    """x: [B, 784] f32. Weights stored [in, out]. Returns [B, 10] f32 softmax."""
    B = x.shape[0]
    tile_b = _choose_tile_b(B)
    grid = (_cdiv(B, tile_b),)

    # One-time layout plumbing for the tiny resident weights (~0.6 MB bf16).
    w1_b = w1.astype(jnp.bfloat16)
    b1_r = b1.reshape(1, HID1).astype(jnp.float32)
    wf_b = wf.astype(jnp.bfloat16)
    w2_p = jnp.zeros((HID2, OUT_PAD), jnp.bfloat16).at[:, :OUT_DIM].set(
        w2.astype(jnp.bfloat16))
    b2_p = jnp.full((1, OUT_PAD), -1e30, jnp.float32).at[0, :OUT_DIM].set(
        b2.astype(jnp.float32))

    out = pl.pallas_call(
        fix_hidden_kernel,
        out_shape=jax.ShapeDtypeStruct((B, OUT_PAD), jnp.float32),
        grid=grid,
        in_specs=[
            pl.BlockSpec((tile_b, IN_DIM), lambda i: (i, 0)),   # x tile (f32, 784 = full dim)
            pl.BlockSpec((IN_DIM, HID1), lambda i: (0, 0)),     # w1 (resident)
            pl.BlockSpec((1, HID1), lambda i: (0, 0)),          # b1 (resident)
            pl.BlockSpec((HID1, HID2), lambda i: (0, 0)),       # fix_layer (resident)
            pl.BlockSpec((HID2, OUT_PAD), lambda i: (0, 0)),    # w2 (resident)
            pl.BlockSpec((1, OUT_PAD), lambda i: (0, 0)),       # b2 (resident)
        ],
        out_specs=pl.BlockSpec((tile_b, OUT_PAD), lambda i: (i, 0)),
        compiler_params=pltpu.CompilerParams(
            dimension_semantics=("parallel",),
            vmem_limit_bytes=32 * 1024 * 1024,
        ),
    )(x.astype(jnp.float32), w1_b, b1_r, wf_b, w2_p, b2_p)

    return out[:, :OUT_DIM]


def init_params(key):
    # Mimic PyTorch defaults: nn.Linear -> U(-1/sqrt(fan_in), 1/sqrt(fan_in));
    # fix_layer -> Normal(0, 0.01), non-trainable.
    k1, k2, k3, k4, k5 = jax.random.split(key, 5)
    lim1 = 1.0 / jnp.sqrt(float(IN_DIM))
    lim2 = 1.0 / jnp.sqrt(float(HID2))
    w1 = jax.random.uniform(k1, (IN_DIM, HID1), jnp.float32, -lim1, lim1)
    b1 = jax.random.uniform(k2, (HID1,), jnp.float32, -lim1, lim1)
    wf = 0.01 * jax.random.normal(k3, (HID1, HID2), jnp.float32)
    w2 = jax.random.uniform(k4, (HID2, OUT_DIM), jnp.float32, -lim2, lim2)
    b2 = jax.random.uniform(k5, (OUT_DIM,), jnp.float32, -lim2, lim2)
    return w1, b1, wf, w2, b2


def ref_forward(x, w1, b1, wf, w2, b2):
    # Plain-JAX reference mirroring the kernel's bf16-operand / f32-accumulate
    # matmuls (exact module semantics, matched precision).
    def mm(a, b):
        return jnp.dot(a.astype(jnp.bfloat16), b.astype(jnp.bfloat16),
                       preferred_element_type=jnp.float32)
    h1 = jnp.maximum(mm(x, w1) + b1, 0.0)
    h2 = jnp.maximum(mm(h1, wf) + 0.005, 0.0)
    logits = mm(h2, w2) + b2
    return jax.nn.softmax(logits, axis=1)


if __name__ == "__main__":
    key = jax.random.PRNGKey(0)
    kx, kp = jax.random.split(key)
    w1, b1, wf, w2, b2 = init_params(kp)

    # B=8: single partial block; B=40: 2 grid steps + partial last block.
    for B in (8, 40):
        x = jax.random.normal(jax.random.fold_in(kx, B), (B, IN_DIM), jnp.float32)

        out = fix_hidden_forward(x, w1, b1, wf, w2, b2)
        out = jax.block_until_ready(out)

        ref = ref_forward(x, w1, b1, wf, w2, b2)

        assert out.shape == (B, OUT_DIM)
        assert bool(jnp.all(jnp.isfinite(out)))
        assert jnp.allclose(out, ref, atol=1e-2, rtol=1e-2)
        assert jnp.allclose(jnp.sum(out, axis=1), 1.0, atol=5e-3)

    print("KERNEL_OK")
</pallas_src>

<mosaic_0001>
module attributes {stable_mosaic.version = 11 : i64} {
  func.func @fix_hidden_kernel(%arg0: i32, %arg1: memref<16x784xf32, #tpu.memory_space<vmem>>, %arg2: memref<784x256xbf16, #tpu.memory_space<vmem>>, %arg3: memref<1x256xf32, #tpu.memory_space<vmem>>, %arg4: memref<256x128xbf16, #tpu.memory_space<vmem>>, %arg5: memref<128x128xbf16, #tpu.memory_space<vmem>>, %arg6: memref<1x128xf32, #tpu.memory_space<vmem>>, %arg7: memref<16x128xf32, #tpu.memory_space<vmem>>) attributes {dimension_semantics = [#tpu.dimension_semantics<parallel>], iteration_bounds = array<i64: 1>, scalar_prefetch = 0 : i64, scratch_operands = 0 : i64, tpu.core_type = #tpu.core_type<tc>, window_params = [{transform_indices = @transform_0, window_bounds = array<i64: 16, 784>}, {pipeline_mode = #tpu.pipeline_mode<synchronous>, transform_indices = @transform_1, window_bounds = array<i64: 784, 256>}, {pipeline_mode = #tpu.pipeline_mode<synchronous>, transform_indices = @transform_2, window_bounds = array<i64: 1, 256>}, {pipeline_mode = #tpu.pipeline_mode<synchronous>, transform_indices = @transform_3, window_bounds = array<i64: 256, 128>}, {pipeline_mode = #tpu.pipeline_mode<synchronous>, transform_indices = @transform_4, window_bounds = array<i64: 128, 128>}, {pipeline_mode = #tpu.pipeline_mode<synchronous>, transform_indices = @transform_5, window_bounds = array<i64: 1, 128>}, {transform_indices = @transform_6, window_bounds = array<i64: 16, 128>}]} {
    %c0 = arith.constant 0 : index
    %c0_0 = arith.constant 0 : index
    %0 = vector.load %arg1[%c0, %c0_0] : memref<16x784xf32, #tpu.memory_space<vmem>>, vector<16x784xf32>
    %1 = arith.truncf %0 : vector<16x784xf32> to vector<16x784xbf16>
    %c0_1 = arith.constant 0 : index
    %c0_2 = arith.constant 0 : index
    %2 = vector.load %arg2[%c0_1, %c0_2] : memref<784x256xbf16, #tpu.memory_space<vmem>>, vector<784x256xbf16>
    %cst = arith.constant dense<0.000000e+00> : vector<16x256xf32>
    %3 = tpu.matmul %1, %2, %cst {dimension_numbers = #tpu.dot_dimension_numbers<[1], [0], [0], [1], [0, 0, 1, 1], [], []>} : vector<16x784xbf16>, vector<784x256xbf16>, vector<16x256xf32> -> vector<16x256xf32>
    %c0_3 = arith.constant 0 : index
    %c0_4 = arith.constant 0 : index
    %4 = vector.load %arg3[%c0_3, %c0_4] : memref<1x256xf32, #tpu.memory_space<vmem>>, vector<1x256xf32>
    %5 = vector.broadcast %4 : vector<1x256xf32> to vector<16x256xf32>
    %6 = arith.addf %3, %5 : vector<16x256xf32>
    %cst_5 = arith.constant 0.000000e+00 : f32
    %7 = vector.broadcast %cst_5 : f32 to vector<16x256xf32>
    %8 = arith.maximumf %6, %7 : vector<16x256xf32>
    %9 = arith.truncf %8 : vector<16x256xf32> to vector<16x256xbf16>
    %c0_6 = arith.constant 0 : index
    %c0_7 = arith.constant 0 : index
    %10 = vector.load %arg4[%c0_6, %c0_7] : memref<256x128xbf16, #tpu.memory_space<vmem>>, vector<256x128xbf16>
    %cst_8 = arith.constant dense<0.000000e+00> : vector<16x128xf32>
    %11 = tpu.matmul %9, %10, %cst_8 {dimension_numbers = #tpu.dot_dimension_numbers<[1], [0], [0], [1], [0, 0, 1, 1], [], []>} : vector<16x256xbf16>, vector<256x128xbf16>, vector<16x128xf32> -> vector<16x128xf32>
    %cst_9 = arith.constant 5.000000e-03 : f32
    %12 = vector.broadcast %cst_9 : f32 to vector<16x128xf32>
    %13 = arith.addf %11, %12 : vector<16x128xf32>
    %cst_10 = arith.constant 0.000000e+00 : f32
    %14 = vector.broadcast %cst_10 : f32 to vector<16x128xf32>
    %15 = arith.maximumf %13, %14 : vector<16x128xf32>
    %16 = arith.truncf %15 : vector<16x128xf32> to vector<16x128xbf16>
    %c0_11 = arith.constant 0 : index
    %c0_12 = arith.constant 0 : index
    %17 = vector.load %arg5[%c0_11, %c0_12] : memref<128x128xbf16, #tpu.memory_space<vmem>>, vector<128x128xbf16>
    %cst_13 = arith.constant dense<0.000000e+00> : vector<16x128xf32>
    %18 = tpu.matmul %16, %17, %cst_13 {dimension_numbers = #tpu.dot_dimension_numbers<[1], [0], [0], [1], [0, 0, 1, 1], [], []>} : vector<16x128xbf16>, vector<128x128xbf16>, vector<16x128xf32> -> vector<16x128xf32>
    %c0_14 = arith.constant 0 : index
    %c0_15 = arith.constant 0 : index
    %19 = vector.load %arg6[%c0_14, %c0_15] : memref<1x128xf32, #tpu.memory_space<vmem>>, vector<1x128xf32>
    %20 = vector.broadcast %19 : vector<1x128xf32> to vector<16x128xf32>
    %21 = arith.addf %18, %20 : vector<16x128xf32>
    %cst_16 = arith.constant dense<0xFF800000> : vector<16xf32>
    %22 = vector.multi_reduction <maximumf>, %21, %cst_16 [1] : vector<16x128xf32> to vector<16xf32>
    %23 = vector.shape_cast %22 : vector<16xf32> to vector<16x1xf32>
    %24 = vector.broadcast %23 : vector<16x1xf32> to vector<16x128xf32>
    %25 = arith.subf %21, %24 : vector<16x128xf32>
    %26 = math.exp %25 : vector<16x128xf32>
    %cst_17 = arith.constant dense<0.000000e+00> : vector<16xf32>
    %27 = vector.multi_reduction <add>, %26, %cst_17 [1] : vector<16x128xf32> to vector<16xf32>
    %28 = vector.shape_cast %27 : vector<16xf32> to vector<16x1xf32>
    %29 = tpu.reciprocal %28 {approx = true} : vector<16x1xf32> -> vector<16x1xf32>
    %30 = vector.broadcast %29 : vector<16x1xf32> to vector<16x128xf32>
    %31 = arith.mulf %26, %30 : vector<16x128xf32>
    %c0_18 = arith.constant 0 : index
    %c0_19 = arith.constant 0 : index
    %32 = vector.load %arg7[%c0_18, %c0_19] : memref<16x128xf32, #tpu.memory_space<vmem>>, vector<16x128xf32>
    tpu.vector_store %arg7[%c0_18, %c0_19], %31 {strides = array<i32>} : memref<16x128xf32, #tpu.memory_space<vmem>>, vector<16x128xf32>,
    return
  }
  func.func @transform_0(%arg0: i32) -> (i32, i32) {
    %c0_i32 = arith.constant 0 : i32
    %c0_i32_0 = arith.constant 0 : i32
    return %arg0, %c0_i32 : i32, i32
  }
  func.func @transform_1(%arg0: i32) -> (i32, i32) {
    %c0_i32 = arith.constant 0 : i32
    %c0_i32_0 = arith.constant 0 : i32
    %c0_i32_1 = arith.constant 0 : i32
    return %c0_i32, %c0_i32_0 : i32, i32
  }
  func.func @transform_2(%arg0: i32) -> (i32, i32) {
    %c0_i32 = arith.constant 0 : i32
    %c0_i32_0 = arith.constant 0 : i32
    %c0_i32_1 = arith.constant 0 : i32
    return %c0_i32, %c0_i32_0 : i32, i32
  }
  func.func @transform_3(%arg0: i32) -> (i32, i32) {
    %c0_i32 = arith.constant 0 : i32
    %c0_i32_0 = arith.constant 0 : i32
    %c0_i32_1 = arith.constant 0 : i32
    return %c0_i32, %c0_i32_0 : i32, i32
  }
  func.func @transform_4(%arg0: i32) -> (i32, i32) {
    %c0_i32 = arith.constant 0 : i32
    %c0_i32_0 = arith.constant 0 : i32
    %c0_i32_1 = arith.constant 0 : i32
    return %c0_i32, %c0_i32_0 : i32, i32
  }
  func.func @transform_5(%arg0: i32) -> (i32, i32) {
    %c0_i32 = arith.constant 0 : i32
    %c0_i32_0 = arith.constant 0 : i32
    %c0_i32_1 = arith.constant 0 : i32
    return %c0_i32, %c0_i32_0 : i32, i32
  }
  func.func @transform_6(%arg0: i32) -> (i32, i32) {
    %c0_i32 = arith.constant 0 : i32
    %c0_i32_0 = arith.constant 0 : i32
    return %arg0, %c0_i32 : i32, i32
  }
}

</mosaic_0001>

<bundles_post_ra>
// kernel: tpu_custom_call.1
= control target key start
LH: loop header
LB: loop body
LE: loop exit
PB: predicated region body
PF: predicated region fallthrough
CT: control target
= control target key end

     0   :  { %11 = vsyncpa [#allocation3], 0  ;;  %s1829_s0 = inlined_call_operand.hbm [shape: f32[8,784], index: 0, kind: input, shape index: {}]   ;;  %s1830_s1 = inlined_call_operand.hbm [shape: bf16[784,256], index: 1, kind: input, shape index: {}]   ;;  %s1831_s2 = inlined_call_operand.vmem [shape: f32[1,256], index: 2, kind: input, shape index: {}]   ;;  %s1832_s3 = inlined_call_operand.hbm [shape: bf16[256,128], index: 3, kind: input, shape index: {}]   ;;  %s1833_s4 = inlined_call_operand.hbm [shape: bf16[128,128], index: 4, kind: input, shape index: {}]   ;;  %s1834_s5 = inlined_call_operand.vmem [shape: f32[1,128], index: 5, kind: input, shape index: {}]   ;;  %s1835_s6 = inlined_call_operand.hbm [shape: f32[8,128], index: 6, kind: output, shape index: {}]  }
   0x1   :  { %12 = vsyncpa [#allocation6], 0 }
   0x2   :  { %13 = vsyncpa [#allocation9], 0 }
   0x3   :  { %14 = vsyncpa [#allocation4], 0 }
   0x4   :  { %19 = vsyncadd [#allocation3], 896  ;;  %s1708_s21 = smov [#allocation5]   ;;  %s1590_s25 = scalar_lea.hbm %s1830_s1, 12544 }
   0x5   :  { %s32_s22 = sshll.u32 %s1708_s21, 4  ;;  %p1591_p0 = scmp.ne.s32.totalorder %s1830_s1, %s1590_s25  ;;  %s33_s22 = int_to_ptr.vmem [resolvable:$true] %s32_s22 }
   0x6   :  { %p1594_p1 = scmp.lt.u32.totalorder %s1590_s25, %s1830_s1 }
   0x8   :  { %p1596_p2 = pnand %p1594_p1, %p1591_p0 }
   0xa   :  { %1599 = shalt.err (!%p1596_p2)
}
   0xb   :  { %s1600_s30 = scalar_lea.vmem %s33_s22, 12544  ;;  %p1605_p4 = scmp.lt.s32.totalorder %s33_s22, %s33_s22 }
   0xc   :  { %p1601_p3 = scmp.ne.s32.totalorder %s33_s22, %s1600_s30  ;;  %p1606_p5 = scmp.lt.s32.totalorder %s1600_s30, %s1600_s30 }
   0xe   :  { %p1607_p6 = por %p1606_p5, %p1605_p4 }
  0x10   :  { %p1608_p7 = pnand %p1607_p6, %p1601_p3 }
  0x12   :  { %1611 = shalt.err (!%p1608_p7)
}
  0x13   :  { %s1709_s7 = smov 128   ;;  %s1710_s8 = smov 8  }
  0x14   :  { %38 = dma.hbm_to_vmem [thread:$0]  %s1830_s1, 12544, %s33_s22, [#allocation6], %s1709_s7, %s1709_s7, %s1710_s8  }
  0x15   :  { %s1711_s11 = smov [#allocation2]   ;;  %s1612_s15 = scalar_lea.hbm %s1829_s0, 896 }
  0x16   :  { %s20_s12 = sshll.u32 %s1711_s11, 4  ;;  %p1613_p8 = scmp.ne.s32.totalorder %s1829_s0, %s1612_s15  ;;  %s21_s12 = int_to_ptr.vmem [resolvable:$true] %s20_s12 }
  0x17   :  { %p1616_p9 = scmp.lt.u32.totalorder %s1612_s15, %s1829_s0 }
  0x19   :  { %p1618_p10 = pnand %p1616_p9, %p1613_p8 }
  0x1b   :  { %1621 = shalt.err (!%p1618_p10)
}
  0x1c   :  { %s1622_s20 = scalar_lea.vmem %s21_s12, 896  ;;  %s1626_s1 = scalar_lea.vmem %s21_s12, 1792 }
  0x1d   :  { %p1623_p11 = scmp.ne.s32.totalorder %s21_s12, %s1622_s20  ;;  %p1627_p12 = scmp.lt.s32.totalorder %s21_s12, %s21_s12 }
  0x1e   :  { %p1628_p13 = scmp.lt.s32.totalorder %s1626_s1, %s1622_s20 }
  0x20   :  { %p1629_p0 = por %p1628_p13, %p1627_p12 }
  0x22   :  { %p1630_p1 = pnand %p1629_p0, %p1623_p11 }
  0x24   :  { %1633 = shalt.err (!%p1630_p1)
}
  0x25   :  { %s1712_s21 = smov 896   ;;  %s1713_s22 = smov 56  }
  0x26   :  { %26 = dma.hbm_to_vmem [thread:$0]  %s1829_s0, 896, %s21_s12, [#allocation3], %s1712_s21, %s1712_s21, %s1713_s22  }
  0x27   :  { %s1714_s25 = smov [#allocation7]   ;;  %s1634_s29 = scalar_lea.hbm %s1832_s3, 2048 }
  0x28   :  { %s46_s26 = sshll.u32 %s1714_s25, 4  ;;  %p1635_p2 = scmp.ne.s32.totalorder %s1832_s3, %s1634_s29  ;;  %s47_s26 = int_to_ptr.vmem [resolvable:$true] %s46_s26 }
  0x29   :  { %p1638_p3 = scmp.lt.u32.totalorder %s1634_s29, %s1832_s3 }
  0x2b   :  { %p1640_p4 = pnand %p1638_p3, %p1635_p2 }
  0x2d   :  { %1643 = shalt.err (!%p1640_p4)
}
  0x2e   :  { %s1644_s13 = scalar_lea.vmem %s47_s26, 2048  ;;  %p1649_p6 = scmp.lt.s32.totalorder %s47_s26, %s47_s26 }
  0x2f   :  { %p1645_p5 = scmp.ne.s32.totalorder %s47_s26, %s1644_s13  ;;  %p1650_p7 = scmp.lt.s32.totalorder %s1644_s13, %s1644_s13 }
  0x31   :  { %p1651_p8 = por %p1650_p7, %p1649_p6 }
  0x33   :  { %p1652_p9 = pnand %p1651_p8, %p1645_p5 }
  0x35   :  { %1655 = shalt.err (!%p1652_p9)
}
  0x36   :  { %s1715_s0 = smov 64   ;;  %s1716_s12 = smov 4  }
  0x37   :  { %52 = dma.hbm_to_vmem [thread:$0]  %s1832_s3, 2048, %s47_s26, [#allocation6], %s1715_s0, %s1715_s0, %s1716_s12  }
  0x38   :  { %s1717_s16 = smov [#allocation8]   ;;  %s1656_s20 = scalar_lea.hbm %s1833_s4, 1024 }
  0x39   :  { %s58_s17 = sshll.u32 %s1717_s16, 4  ;;  %p1657_p10 = scmp.ne.s32.totalorder %s1833_s4, %s1656_s20  ;;  %s59_s17 = int_to_ptr.vmem [resolvable:$true] %s58_s17 }
  0x3a   :  { %p1660_p11 = scmp.lt.u32.totalorder %s1656_s20, %s1833_s4 }
  0x3c   :  { %p1662_p12 = pnand %p1660_p11, %p1657_p10 }
  0x3e   :  { %1665 = shalt.err (!%p1662_p12)
}
  0x3f   :  { %s1666_s24 = scalar_lea.vmem %s59_s17, 1024  ;;  %p1671_p0 = scmp.lt.s32.totalorder %s59_s17, %s59_s17 }
  0x40   :  { %p1667_p13 = scmp.ne.s32.totalorder %s59_s17, %s1666_s24  ;;  %p1672_p1 = scmp.lt.s32.totalorder %s1666_s24, %s1666_s24 }
  0x42   :  { %p1673_p2 = por %p1672_p1, %p1671_p0 }
  0x44   :  { %p1674_p3 = pnand %p1673_p2, %p1667_p13 }
  0x46   :  { %1677 = shalt.err (!%p1674_p3)
}
  0x47   :  { %64 = dma.hbm_to_vmem [thread:$0]  %s1833_s4, 1024, %s59_s17, [#allocation9], %s1715_s0, %s1715_s0, %s1716_s12  }
  0x48   :  { %1700 = dma.done.wait [#allocation3], 1792  }
  0x49   :  { %1701 = vsyncadd [#allocation3], 4294965504 }
  0x4a   :  { %1702 = dma.done.wait [#allocation6], 14592  }
  0x4b   :  { %1703 = vsyncadd [#allocation6], 4294952704 }
  0x4c   :  { %1704 = dma.done.wait [#allocation9], 1024  }
  0x4d   :  { %1705 = vsyncadd [#allocation9], 4294966272  ;;  %v1411_v0 = vld [vmem:[#allocation5 + $0x104] ss:$8 sps:$4 sm:$0xff]   ;;  %v1413_v1 = vld [vmem:[#allocation5 + $0x100] ss:$8 sps:$4 sm:$0xff]  }
  0x4e   :  { %748 = vmatprep.subr.bf16.mxu0 %v1411_v0  ;;  %v1414_v2 = vld [vmem:[#allocation5 + $0x114] ss:$8 sps:$4 sm:$0xff]   ;;  %v1416_v3 = vld [vmem:[#allocation5 + $0x110] ss:$8 sps:$4 sm:$0xff]   ;;  %v1417_v4 = vld [vmem:[#allocation5 + $0x124] ss:$8 sps:$4 sm:$0xff]  }
  0x4f   :  { %749 = vmatpush1.bf16.msra.mxu0 %v1413_v1  ;;  %v1419_v5 = vld [vmem:[#allocation5 + $0x120] ss:$8 sps:$4 sm:$0xff]   ;;  %v1420_v6 = vld [vmem:[#allocation5 + $0x134] ss:$8 sps:$4 sm:$0xff]   ;;  %v1422_v7 = vld [vmem:[#allocation5 + $0x130] ss:$8 sps:$4 sm:$0xff]  }
  0x50   :  { %750 = vmatprep.subr.bf16.mxu0 %v1414_v2  ;;  %v1423_v8 = vld [vmem:[#allocation5 + $0x144] ss:$8 sps:$4 sm:$0xff]   ;;  %v1425_v9 = vld [vmem:[#allocation5 + $0x140] ss:$8 sps:$4 sm:$0xff]   ;;  %v1426_v10 = vld [vmem:[#allocation5 + $0x154] ss:$8 sps:$4 sm:$0xff]  }
  0x51   :  { %v1428_v11 = vld [vmem:[#allocation5 + $0x150] ss:$8 sps:$4 sm:$0xff]   ;;  %v1429_v12 = vld [vmem:[#allocation5 + $0x164] ss:$8 sps:$4 sm:$0xff]   ;;  %v1431_v16 = vld [vmem:[#allocation5 + $0x160] ss:$8 sps:$4 sm:$0xff]  }
  0x52   :  { %v83_v13 = vld [vmem:[#allocation2 + $0x18] sm:$0xff]  ;;  %v90_v14 = vld [vmem:[#allocation2 + $0x50] sm:$0xff]  ;;  %v1432_v17 = vld [vmem:[#allocation5 + $0x174] ss:$8 sps:$4 sm:$0xff]   ;;  %vm701_vm0 = vcmask 130048   ;;  %vm1720_vm1 = vmmov 0  }
  0x53   :  { %751 = vmatpush1.bf16.msra.mxu0 %v1416_v3  ;;  %v97_v15 = vpack.c.bf16 %v90_v14, %v83_v13  ;;  %v1465_v18 = vld [vmem:[#allocation5 + $0x4] ss:$8 sps:$4 sm:$0xff]   ;;  %v1434_v19 = vld [vmem:[#allocation5 + $0x170] ss:$8 sps:$4 sm:$0xff]   ;;  %v1470_v21 = vld [vmem:[#allocation5] ss:$8 sps:$4 sm:$0xff]  }
  0x54   :  { %752 = vmatprep.subr.bf16.mxu0 %v1417_v4  ;;  %v1435_v20 = vld [vmem:[#allocation5 + $0x184] ss:$8 sps:$4 sm:$0xff]   ;;  %705 = vmatprep.subr.bf16.mxu1 %v1465_v18  ;;  %v1471_v22 = vld [vmem:[#allocation5 + $0x14] ss:$8 sps:$4 sm:$0xff]   ;;  %v1437_v23 = vld [vmem:[#allocation5 + $0x180] ss:$8 sps:$4 sm:$0xff]  }
  0x55   :  { %780 = vmatprep.mubr.bf16.mxu0 %v97_v15  ;;  %706 = vmatpush1.bf16.msra.mxu1 %v1470_v21  ;;  %v1476_v24 = vld [vmem:[#allocation5 + $0x10] ss:$8 sps:$4 sm:$0xff]   ;;  %v1477_v25 = vld [vmem:[#allocation5 + $0x24] ss:$8 sps:$4 sm:$0xff]   ;;  %v1438_v26 = vld [vmem:[#allocation5 + $0x194] ss:$8 sps:$4 sm:$0xff]  }
  0x56   :  { %707 = vmatprep.subr.bf16.mxu1 %v1471_v22  ;;  %v1482_v27 = vld [vmem:[#allocation5 + $0x20] ss:$8 sps:$4 sm:$0xff]   ;;  %v1483_v28 = vld [vmem:[#allocation5 + $0x34] ss:$8 sps:$4 sm:$0xff]   ;;  %v1440_v29 = vld [vmem:[#allocation5 + $0x190] ss:$8 sps:$4 sm:$0xff]  }
  0x57   :  { %753 = vmatpush1.bf16.msra.mxu0 %v1419_v5  ;;  %v1441_v30 = vld [vmem:[#allocation5 + $0x1a4] ss:$8 sps:$4 sm:$0xff]   ;;  %v1488_v31 = vld [vmem:[#allocation5 + $0x30] ss:$8 sps:$4 sm:$0xff]   ;;  %v1443_v33 = vld [vmem:[#allocation5 + $0x1a0] ss:$8 sps:$4 sm:$0xff]  }
  0x58   :  { %754 = vmatprep.subr.bf16.mxu0 %v1420_v6  ;;  %v1489_v32 = vld [vmem:[#allocation5 + $0x44] ss:$8 sps:$4 sm:$0xff]   ;;  %v1444_v34 = vld [vmem:[#allocation5 + $0x1b4] ss:$8 sps:$4 sm:$0xff]   ;;  %v1494_v35 = vld [vmem:[#allocation5 + $0x40] ss:$8 sps:$4 sm:$0xff]  }
  0x59   :  { %708 = vmatpush1.bf16.msra.mxu1 %v1476_v24  ;;  %v1495_v36 = vld [vmem:[#allocation5 + $0x54] ss:$8 sps:$4 sm:$0xff]   ;;  %v1446_v37 = vld [vmem:[#allocation5 + $0x1b0] ss:$8 sps:$4 sm:$0xff]   ;;  %v1447_v38 = vld [vmem:[#allocation5 + $0x1c4] ss:$8 sps:$4 sm:$0xff]  }
  0x5a   :  { %709 = vmatprep.subr.bf16.mxu1 %v1477_v25  ;;  %v1500_v39 = vld [vmem:[#allocation5 + $0x50] ss:$8 sps:$4 sm:$0xff]   ;;  %v1501_v40 = vld [vmem:[#allocation5 + $0x64] ss:$8 sps:$4 sm:$0xff]   ;;  %v1449_v41 = vld [vmem:[#allocation5 + $0x1c0] ss:$8 sps:$4 sm:$0xff]  }
  0x5b   :  { %755 = vmatpush1.bf16.msra.mxu0 %v1422_v7  ;;  %v1450_v42 = vld [vmem:[#allocation5 + $0x1d4] ss:$8 sps:$4 sm:$0xff]   ;;  %v1506_v43 = vld [vmem:[#allocation5 + $0x60] ss:$8 sps:$4 sm:$0xff]   ;;  %v1452_v45 = vld [vmem:[#allocation5 + $0x1d0] ss:$8 sps:$4 sm:$0xff]  }
  0x5c   :  { %756 = vmatprep.subr.bf16.mxu0 %v1423_v8  ;;  %v1507_v44 = vld [vmem:[#allocation5 + $0x74] ss:$8 sps:$4 sm:$0xff]   ;;  %v1453_v46 = vld [vmem:[#allocation5 + $0x1e4] ss:$8 sps:$4 sm:$0xff]   ;;  %v1512_v47 = vld [vmem:[#allocation5 + $0x70] ss:$8 sps:$4 sm:$0xff]  }
  0x5d   :  { %710 = vmatpush1.bf16.msra.mxu1 %v1482_v27  ;;  %v1513_v48 = vld [vmem:[#allocation5 + $0x84] ss:$8 sps:$4 sm:$0xff]   ;;  %v1455_v49 = vld [vmem:[#allocation5 + $0x1e0] ss:$8 sps:$4 sm:$0xff]   ;;  %v1456_v50 = vld [vmem:[#allocation5 + $0x1f4] ss:$8 sps:$4 sm:$0xff]  }
  0x5e   :  { %711 = vmatprep.subr.bf16.mxu1 %v1483_v28  ;;  %v1518_v51 = vld [vmem:[#allocation5 + $0x80] ss:$8 sps:$4 sm:$0xff]   ;;  %v1519_v52 = vld [vmem:[#allocation5 + $0x94] ss:$8 sps:$4 sm:$0xff]   ;;  %v1458_v53 = vld [vmem:[#allocation5 + $0x1f0] ss:$8 sps:$4 sm:$0xff]  }
  0x5f   :  { %757 = vmatpush1.bf16.msra.mxu0 %v1425_v9  ;;  %v82_v54 = vld [vmem:[#allocation2 + $0x10] sm:$0xff]  ;;  %v89_v55 = vld [vmem:[#allocation2 + $0x48] sm:$0xff]  ;;  %v92_v62 = vld [vmem:[#allocation2 + $0x60] sm:$0xff] }
  0x60   :  { %758 = vmatprep.subr.bf16.mxu0 %v1426_v10  ;;  %v1461_v56 = vld [vmem:[#allocation5 + $0x204] ss:$8 sps:$4 sm:$0xff]   ;;  %v1524_v57 = vld [vmem:[#allocation5 + $0x90] ss:$8 sps:$4 sm:$0xff]   ;;  %v1459_v58 = vld [vmem:[#allocation5 + $0x200] ss:$8 sps:$4 sm:$0xff]   ;;  %v96_v59 = vpack.c.bf16 %v89_v55, %v82_v54 }
  0x61   :  { %712 = vmatpush1.bf16.msra.mxu1 %v1488_v31  ;;  %v1525_v60 = vld [vmem:[#allocation5 + $0xa4] ss:$8 sps:$4 sm:$0xff]   ;;  %v85_v61 = vld [vmem:[#allocation2 + $0x28] sm:$0xff]  ;;  %v1530_v1 = vld [vmem:[#allocation5 + $0xa0] ss:$8 sps:$4 sm:$0xff]  }
  0x62   :  { %713 = vmatprep.subr.bf16.mxu1 %v1489_v32  ;;  %v1464_v63 = vld [vmem:[#allocation5 + $0x214] ss:$8 sps:$4 sm:$0xff]   ;;  %v99_v0 = vpack.c.bf16 %v92_v62, %v85_v61  ;;  %v1462_v3 = vld [vmem:[#allocation5 + $0x210] ss:$8 sps:$4 sm:$0xff]   ;;  %v1469_v4 = vld [vmem:[#allocation5 + $0x224] ss:$8 sps:$4 sm:$0xff]  }
  0x63   :  { %759 = vmatpush1.bf16.msra.mxu0 %v1428_v11  ;;  %v1531_v2 = vld [vmem:[#allocation5 + $0xb4] ss:$8 sps:$4 sm:$0xff]   ;;  %v1536_v7 = vld [vmem:[#allocation5 + $0xb0] ss:$8 sps:$4 sm:$0xff]   ;;  %v1537_v9 = vld [vmem:[#allocation5 + $0xc4] ss:$8 sps:$4 sm:$0xff]  }
  0x64   :  { %760 = vmatprep.subr.bf16.mxu0 %v1429_v12  ;;  %v81_v5 = vld [vmem:[#allocation2 + $0x8] sm:$0xff]  ;;  %v88_v6 = vld [vmem:[#allocation2 + $0x40] sm:$0xff]  ;;  %v1467_v10 = vld [vmem:[#allocation5 + $0x220] ss:$8 sps:$4 sm:$0xff]   ;;  %v1718_v61 = vmov 0  }
  0x65   :  { %714 = vmatpush1.bf16.msra.mxu1 %v1494_v35  ;;  %v95_v8 = vpack.c.bf16 %v88_v6, %v81_v5  ;;  %v1475_v11 = vld [vmem:[#allocation5 + $0x234] ss:$8 sps:$4 sm:$0xff]   ;;  %v1542_v12 = vld [vmem:[#allocation5 + $0xc0] ss:$8 sps:$4 sm:$0xff]   ;;  %v1473_v14 = vld [vmem:[#allocation5 + $0x230] ss:$8 sps:$4 sm:$0xff]  }
  0x66   :  { %715 = vmatprep.subr.bf16.mxu1 %v1495_v36  ;;  %v1543_v13 = vld [vmem:[#allocation5 + $0xd4] ss:$8 sps:$4 sm:$0xff]   ;;  %v1481_v15 = vld [vmem:[#allocation5 + $0x244] ss:$8 sps:$4 sm:$0xff]   ;;  %v1485_v22 = vld [vmem:[#allocation5 + $0x250] ss:$8 sps:$4 sm:$0xff]  }
  0x67   :  { %761 = vmatpush1.bf16.msra.mxu0 %v1431_v16  ;;  %737 = vmatprep.mubr.bf16.mxu1 %v95_v8  ;;  %v1479_v16 = vld [vmem:[#allocation5 + $0x240] ss:$8 sps:$4 sm:$0xff]   ;;  %v1487_v18 = vld [vmem:[#allocation5 + $0x254] ss:$8 sps:$4 sm:$0xff]   ;;  %v1557_v24 = vld [vmem:[#allocation5 + $0xf0] ss:$8 sps:$4 sm:$0xff]  }
  0x68   :  { %762 = vmatprep.subr.bf16.mxu0 %v1432_v17  ;;  %v1548_v17 = vld [vmem:[#allocation5 + $0xd0] ss:$8 sps:$4 sm:$0xff]   ;;  %v1555_v21 = vld [vmem:[#allocation5 + $0xf4] ss:$8 sps:$4 sm:$0xff]   ;;  %v1491_v28 = vld [vmem:[#allocation5 + $0x260] ss:$8 sps:$4 sm:$0xff]  }
  0x69   :  { %716 = vmatpush1.bf16.msra.mxu1 %v1500_v39  ;;  %v80_v25 = vld [vmem:[#allocation2] sm:$0xff]  ;;  %v1560_v32 = vld [vmem:[#allocation7 + $0x48] sm:$0xff]   ;;  %v1562_v36 = vld [vmem:[#allocation7 + $0x50] sm:$0xff]   ;;  %v1719_v8 = vmov 0.0  }
  0x6a   :  { %717 = vmatprep.subr.bf16.mxu1 %v1501_v40  ;;  %v1558_v27 = vld [vmem:[#allocation7 + $0x40] sm:$0xff]   ;;  %v1561_v35 = vld [vmem:[#allocation7 + $0x8] sm:$0xff]   ;;  %v1563_v39 = vld [vmem:[#allocation7 + $0x10] sm:$0xff]  }
  0x6b   :  { %763 = vmatpush1.bf16.msra.mxu0 %v1434_v19  ;;  %v1549_v19 = vld [vmem:[#allocation5 + $0xe4] ss:$8 sps:$4 sm:$0xff]   ;;  %v1559_v31 = vld [vmem:[#allocation7] sm:$0xff]  }
  0x6c   :  { %764 = vmatprep.subr.bf16.mxu0 %v1435_v20  ;;  %v1554_v20 = vld [vmem:[#allocation5 + $0xe0] ss:$8 sps:$4 sm:$0xff]   ;;  %v1547_v54 = vld [vmem:[#allocation5 + $0x2f4] ss:$8 sps:$4 sm:$0xff]   ;;  %v1545_v55 = vld [vmem:[#allocation5 + $0x2f0] ss:$8 sps:$4 sm:$0xff]  }
  0x6d   :  { %718 = vmatpush1.bf16.msra.mxu1 %v1506_v43  ;;  %v1564_v40 = vld [vmem:[#allocation7 + $0x58] sm:$0xff]   ;;  %v86_v62 = vld [vmem:[#allocation2 + $0x30] sm:$0xff] }
  0x6e   :  { %719 = vmatprep.subr.bf16.mxu1 %v1507_v44  ;;  %v1565_v43 = vld [vmem:[#allocation7 + $0x18] sm:$0xff]   ;;  %v1566_v44 = vld [vmem:[#allocation7 + $0x60] sm:$0xff]   ;;  %v1571_v5 = vld [vmem:[#allocation7 + $0x30] sm:$0xff]  }
  0x6f   :  { %765 = vmatpush1.bf16.msra.mxu0 %v1437_v23  ;;  %v1493_v23 = vld [vmem:[#allocation5 + $0x264] ss:$8 sps:$4 sm:$0xff]  }
  0x70   :  { %766 = vmatprep.subr.bf16.mxu0 %v1438_v26  ;;  %v87_v26 = vld [vmem:[#allocation2 + $0x38] sm:$0xff] }
  0x71   :  { %720 = vmatpush1.bf16.msra.mxu1 %v1512_v47  ;;  %v1521_v47 = vld [vmem:[#allocation5 + $0x2b0] ss:$8 sps:$4 sm:$0xff]   ;;  %v1572_v6 = vld [vmem:[#allocation7 + $0x78] sm:$0xff]  }
  0x72   :  { %721 = vmatprep.subr.bf16.mxu1 %v1513_v48  ;;  %v1529_v48 = vld [vmem:[#allocation5 + $0x2c4] ss:$8 sps:$4 sm:$0xff]  }
  0x73   :  { %767 = vmatpush1.bf16.msra.mxu0 %v1440_v29  ;;  %v1499_v29 = vld [vmem:[#allocation5 + $0x274] ss:$8 sps:$4 sm:$0xff]  }
  0x74   :  { %768 = vmatprep.subr.bf16.mxu0 %v1441_v30  ;;  %v94_v30 = vpack.c.bf16 %v87_v26, %v80_v25 }
  0x75   :  { %722 = vmatpush1.bf16.msra.mxu1 %v1518_v51  ;;  %v1533_v51 = vld [vmem:[#allocation5 + $0x2d0] ss:$8 sps:$4 sm:$0xff]  }
  0x76   :  { %723 = vmatprep.subr.bf16.mxu1 %v1519_v52  ;;  %v1541_v52 = vld [vmem:[#allocation5 + $0x2e4] ss:$8 sps:$4 sm:$0xff]  }
  0x77   :  { %769 = vmatpush1.bf16.msra.mxu0 %v1443_v33  ;;  %v1497_v33 = vld [vmem:[#allocation5 + $0x270] ss:$8 sps:$4 sm:$0xff]  }
  0x78   :  { %770 = vmatprep.subr.bf16.mxu0 %v1444_v34  ;;  %v1505_v34 = vld [vmem:[#allocation5 + $0x284] ss:$8 sps:$4 sm:$0xff]  }
  0x79   :  { %724 = vmatpush1.bf16.msra.mxu1 %v1524_v57  ;;  %v91_v57 = vld [vmem:[#allocation2 + $0x58] sm:$0xff] }
  0x7a   :  { %725 = vmatprep.subr.bf16.mxu1 %v1525_v60  ;;  %v1551_v60 = vld [vmem:[#allocation5 + $0x300] ss:$8 sps:$4 sm:$0xff]  }
  0x7b   :  { %771 = vmatpush1.bf16.msra.mxu0 %v1446_v37  ;;  %v1503_v37 = vld [vmem:[#allocation5 + $0x280] ss:$8 sps:$4 sm:$0xff]  }
  0x7c   :  { %772 = vmatprep.subr.bf16.mxu0 %v1447_v38  ;;  %v1511_v38 = vld [vmem:[#allocation5 + $0x294] ss:$8 sps:$4 sm:$0xff]  }
  0x7d   :  { %726 = vmatpush1.bf16.msra.mxu1 %v1530_v1  ;;  %v1567_v1 = vld [vmem:[#allocation7 + $0x20] sm:$0xff]  }
  0x7e   :  { %727 = vmatprep.subr.bf16.mxu1 %v1531_v2  ;;  %v1568_v2 = vld [vmem:[#allocation7 + $0x68] sm:$0xff]  }
  0x7f   :  { %773 = vmatpush1.bf16.msra.mxu0 %v1449_v41  ;;  %v1509_v41 = vld [vmem:[#allocation5 + $0x290] ss:$8 sps:$4 sm:$0xff]  }
  0x80   :  { %774 = vmatprep.subr.bf16.mxu0 %v1450_v42  ;;  %v1517_v42 = vld [vmem:[#allocation5 + $0x2a4] ss:$8 sps:$4 sm:$0xff]  }
  0x81   :  { %728 = vmatpush1.bf16.msra.mxu1 %v1536_v7  ;;  %v1573_v7 = vld [vmem:[#allocation7 + $0x38] sm:$0xff]  }
  0x82   :  { %729 = vmatprep.subr.bf16.mxu1 %v1537_v9 }
  0x83   :  { %775 = vmatpush1.bf16.msra.mxu0 %v1452_v45  ;;  %v1515_v45 = vld [vmem:[#allocation5 + $0x2a0] ss:$8 sps:$4 sm:$0xff]  }
  0x84   :  { %776 = vmatprep.subr.bf16.mxu0 %v1453_v46  ;;  %v1523_v46 = vld [vmem:[#allocation5 + $0x2b4] ss:$8 sps:$4 sm:$0xff]  }
  0x85   :  { %730 = vmatpush1.bf16.msra.mxu1 %v1542_v12 }
  0x86   :  { %731 = vmatprep.subr.bf16.mxu1 %v1543_v13  ;;  %v201_v13 = vlaneseq }
  0x87   :  { %777 = vmatpush1.bf16.msra.mxu0 %v1455_v49  ;;  %v1527_v49 = vld [vmem:[#allocation5 + $0x2c0] ss:$8 sps:$4 sm:$0xff]  }
  0x88   :  { %778 = vmatprep.subr.bf16.mxu0 %v1456_v50  ;;  %v1535_v50 = vld [vmem:[#allocation5 + $0x2d4] ss:$8 sps:$4 sm:$0xff]  }
  0x89   :  { %732 = vmatpush1.bf16.msra.mxu1 %v1548_v17 }
  0x8a   :  { %733 = vmatprep.subr.bf16.mxu1 %v1549_v19 }
  0x8b   :  { %779 = vmatpush1.bf16.msra.mxu0 %v1458_v53  ;;  %v1539_v53 = vld [vmem:[#allocation5 + $0x2e0] ss:$8 sps:$4 sm:$0xff]  }
  0x8c   :  { %791 = vmatprep.subr.bf16.mxu0 %v1461_v56  ;;  %v84_v56 = vld [vmem:[#allocation2 + $0x20] sm:$0xff] }
  0x8d   :  { %734 = vmatpush1.bf16.msra.mxu1 %v1554_v20 }
  0x8e   :  { %781 = vmatmul.mubr.bf16.vlgmr.msra.gmra.mrb[0].mxu0 %v96_v59  ;;  %735 = vmatprep.subr.bf16.mxu1 %v1555_v21  ;;  %v98_v59 = vpack.c.bf16 %v91_v57, %v84_v56  ;;  %v1321_v57 = vld [vmem:[%s1834_s5] ss:$0 sm:$0xff] }
  0x8f   :  { %792 = vmatpush1.bf16.msra.mxu0 %v1459_v58  ;;  %823 = vmatprep.mubr.bf16.mxu0 %v99_v0  ;;  %v1553_v58 = vld [vmem:[#allocation5 + $0x304] ss:$8 sps:$4 sm:$0xff]  }
  0x90   :  { %793 = vmatprep.subr.bf16.mxu0 %v1464_v63  ;;  %v93_v63 = vld [vmem:[#allocation2 + $0x68] sm:$0xff] }
  0x91   :  { %736 = vmatpush1.bf16.msra.mxu1 %v1557_v24  ;;  %v100_v0 = vpack.c.bf16 %v93_v63, %v86_v62 }
  0x92   :  { %1330 = vmatprep.subr.bf16.mxu1 %v1558_v27 }
  0x93   :  { %794 = vmatpush1.bf16.msra.mxu0 %v1462_v3  ;;  %v1569_v3 = vld [vmem:[#allocation7 + $0x28] sm:$0xff]  }
  0x94   :  { %795 = vmatprep.subr.bf16.mxu0 %v1469_v4  ;;  %738 = vmatmul.mubr.bf16.vlgmr.msra.gmra.mrb[0].mxu1 %v94_v30  ;;  %v1570_v4 = vld [vmem:[#allocation7 + $0x70] sm:$0xff]  }
  0x95   :  { %1331 = vmatpush3.bf16.msra.mxu1 %v1559_v31 }
  0x96   :  { %1332 = vmatprep.subr.bf16.mxu1 %v1560_v32 }
  0x97   :  { %796 = vmatpush1.bf16.msra.mxu0 %v1467_v10 }
  0x98   :  { %797 = vmatprep.subr.bf16.mxu0 %v1475_v11 }
  0x99   :  { %1333 = vmatpush3.bf16.msra.mxu1 %v1561_v35 }
  0x9a   :  { %1334 = vmatprep.subr.bf16.mxu1 %v1562_v36 }
  0x9b   :  { %798 = vmatpush1.bf16.msra.mxu0 %v1473_v14  ;;  %v202_v14 = vshrl.u32 %v201_v13, 7 }
  0x9c   :  { %799 = vmatprep.subr.bf16.mxu0 %v1481_v15 }
  0x9d   :  { %1335 = vmatpush3.bf16.msra.mxu1 %v1563_v39  ;;  %v203_v15 = vsub.s32 0, %v202_v14  ;;  %v207_v17 = vsub.s32 1, %v202_v14  ;;  %v1575_v39 = vld [vmem:[#allocation8 + $0x8] sm:$0xff]  }
  0x9e   :  { %1336 = vmatprep.subr.bf16.mxu1 %v1564_v40  ;;  %v1576_v40 = vld [vmem:[#allocation8 + $0x10] sm:$0xff]  }
  0x9f   :  { %800 = vmatpush1.bf16.msra.mxu0 %v1479_v16  ;;  %v199_v16 = vld [vmem:[%s1831_s2] sm:$0x3] }
  0xa0   :  { %801 = vmatprep.subr.bf16.mxu0 %v1487_v18  ;;  %v204_v18 = vrot.slane %v199_v16, %v203_v15  ;;  %v208_v19 = vrot.slane %v199_v16, %v207_v17 }
  0xa1   :  { %1337 = vmatpush3.bf16.msra.mxu1 %v1565_v43  ;;  %v1579_v43 = vld [vmem:[#allocation8 + $0x28] sm:$0xff]  }
  0xa2   :  { %1338 = vmatprep.subr.bf16.mxu1 %v1566_v44  ;;  %v1580_v44 = vld [vmem:[#allocation8 + $0x30] sm:$0xff]  }
  0xa3   :  { %802 = vmatpush1.bf16.msra.mxu0 %v1485_v22 }
  0xa4   :  { %803 = vmatprep.subr.bf16.mxu0 %v1493_v23 }
  0xa5   :  { %1339 = vmatpush3.bf16.msra.mxu1 %v1567_v1 }
  0xa6   :  { %1340 = vmatprep.subr.bf16.mxu1 %v1568_v2 }
  0xa7   :  { %804 = vmatpush1.bf16.msra.mxu0 %v1491_v28 }
  0xa8   :  { %805 = vmatprep.subr.bf16.mxu0 %v1499_v29 }
  0xa9   :  { %1341 = vmatpush3.bf16.msra.mxu1 %v1569_v3 }
  0xaa   :  { %1342 = vmatprep.subr.bf16.mxu1 %v1570_v4 }
  0xab   :  { %806 = vmatpush1.bf16.msra.mxu0 %v1497_v33 }
  0xac   :  { %807 = vmatprep.subr.bf16.mxu0 %v1505_v34 }
  0xad   :  { %1343 = vmatpush3.bf16.msra.mxu1 %v1571_v5 }
  0xae   :  { %1344 = vmatprep.subr.bf16.mxu1 %v1572_v6 }
  0xaf   :  { %808 = vmatpush1.bf16.msra.mxu0 %v1503_v37 }
  0xb0   :  { %809 = vmatprep.subr.bf16.mxu0 %v1511_v38  ;;  %v1574_v38 = vld [vmem:[#allocation8] sm:$0xff]  }
  0xb1   :  { %1345 = vmatpush3.bf16.msra.mxu1 %v1573_v7 }
  0xb2   :  { %1361 = vmatprep.subr.bf16.mxu1 %v1719_v8 }
  0xb3   :  { %810 = vmatpush1.bf16.msra.mxu0 %v1509_v41  ;;  %v1577_v41 = vld [vmem:[#allocation8 + $0x18] sm:$0xff]  }
  0xb4   :  { %811 = vmatprep.subr.bf16.mxu0 %v1517_v42  ;;  %v1578_v42 = vld [vmem:[#allocation8 + $0x20] sm:$0xff]  }
  0xb7   :  { %812 = vmatpush1.bf16.msra.mxu0 %v1515_v45  ;;  %v1581_v45 = vld [vmem:[#allocation8 + $0x38] sm:$0xff]  }
  0xb8   :  { %813 = vmatprep.subr.bf16.mxu0 %v1523_v46 }
  0xbb   :  { %814 = vmatpush1.bf16.msra.mxu0 %v1521_v47 }
  0xbc   :  { %815 = vmatprep.subr.bf16.mxu0 %v1529_v48 }
  0xbf   :  { %816 = vmatpush1.bf16.msra.mxu0 %v1527_v49 }
  0xc0   :  { %817 = vmatprep.subr.bf16.mxu0 %v1535_v50 }
  0xc3   :  { %818 = vmatpush1.bf16.msra.mxu0 %v1533_v51 }
  0xc4   :  { %819 = vmatprep.subr.bf16.mxu0 %v1541_v52 }
  0xc7   :  { %820 = vmatpush1.bf16.msra.mxu0 %v1539_v53 }
  0xc8   :  { %821 = vmatprep.subr.bf16.mxu0 %v1547_v54 }
  0xcb   :  { %822 = vmatpush1.bf16.msra.mxu0 %v1545_v55 }
  0xcc   :  { %834 = vmatprep.subr.bf16.mxu0 %v1553_v58 }
  0xce   :  { %824 = vmatmul.mubr.bf16.vlgmr.msra.gmra.mrb[0].mxu0 %v98_v59 }
  0xcf   :  { %835 = vmatpush1.bf16.msra.mxu0 %v1551_v60  ;;  %866 = vmatprep.mubr.bf16.mxu0 %v1718_v61 }
  0xda   :  { %1304 = vmatmul.mubr.msk.bf16.vlgmr.msra.gmra.mrb[0].mxu0 %vm701_vm0, %v100_v0 }
 0x167   :  { %v739_v9 = vpop.f32.mrb[0].mxu1 }
 0x168   :  { %v741_v10 = vpop.f32.mrb[1].mxu1  ;;  %v740_v20 = vadd.f32 %v739_v9, %v204_v18 }
 0x169   :  { %v743_v11 = vpop.f32.mrb[2].mxu1  ;;  %v742_v21 = vadd.f32 %v741_v10, %v208_v19 }
 0x16a   :  { %v745_v12 = vpop.f32.mrb[3].mxu1  ;;  %v744_v23 = vadd.f32 %v743_v11, %v204_v18 }
 0x16b   :  { %v746_v26 = vadd.f32 %v745_v12, %v208_v19 }
 0x1ad   :  { %v868_v22 = vpop.f32.mrb[0].mxu0 }
 0x1ae   :  { %v1382_v24 = vadd.f32 %v868_v22, %v740_v20  ;;  %v870_v25 = vpop.f32.mrb[1].mxu0 }
 0x1af   :  { %v1384_v27 = vadd.f32 %v870_v25, %v742_v21  ;;  %v872_v28 = vpop.f32.mrb[2].mxu0 }
 0x1b0   :  { %v1386_v29 = vadd.f32 %v872_v28, %v744_v23  ;;  %v874_v30 = vpop.f32.mrb[3].mxu0  ;;  %v877_v32 = vmax.f32 %v1382_v24, 0.0 }
 0x1b1   :  { %v1388_v31 = vadd.f32 %v874_v30, %v746_v26  ;;  %v878_v34 = vmax.f32 %v1384_v27, 0.0 }
 0x1b2   :  { %v879_v33 = vmax.f32 %v1386_v29, 0.0 }
 0x1b3   :  { %v880_v35 = vmax.f32 %v1388_v31, 0.0 }
 0x1b4   :  { %v881_v36 = vpack.c.bf16 %v879_v33, %v877_v32 }
 0x1b5   :  { %v882_v37 = vpack.c.bf16 %v880_v35, %v878_v34 }
 0x1b7   :  { %1043 = vmatprep.mubr.bf16.mxu1 %v882_v37 }
 0x1b8   :  { %1044 = vmatmul.mubr.bf16.vlgmr.msra.gmra.mrb[4].mxu1 %v881_v36 }
 0x1b9   :  { %1362 = vmatpush3.bf16.msra.mxu1 %v1574_v38  ;;  %1377 = vmatprep.mubr.msk.bf16.mxu1 %vm1720_vm1, %v1719_v8 }
 0x1ba   :  { %1363 = vmatprep.subr.bf16.mxu1 %v1719_v8 }
 0x1bd   :  { %1364 = vmatpush3.bf16.msra.mxu1 %v1575_v39 }
 0x1be   :  { %1365 = vmatprep.subr.bf16.mxu1 %v1719_v8 }
 0x1c1   :  { %1366 = vmatpush3.bf16.msra.mxu1 %v1576_v40 }
 0x1c2   :  { %1367 = vmatprep.subr.bf16.mxu1 %v1719_v8 }
 0x1c5   :  { %1368 = vmatpush3.bf16.msra.mxu1 %v1577_v41 }
 0x1c6   :  { %1369 = vmatprep.subr.bf16.mxu1 %v1719_v8 }
 0x1c9   :  { %1370 = vmatpush3.bf16.msra.mxu1 %v1578_v42 }
 0x1ca   :  { %1371 = vmatprep.subr.bf16.mxu1 %v1719_v8 }
 0x1cd   :  { %1372 = vmatpush3.bf16.msra.mxu1 %v1579_v43 }
 0x1ce   :  { %1373 = vmatprep.subr.bf16.mxu1 %v1719_v8 }
 0x1d1   :  { %1374 = vmatpush3.bf16.msra.mxu1 %v1580_v44 }
 0x1d2   :  { %1375 = vmatprep.subr.bf16.mxu1 %v1719_v8 }
 0x1d5   :  { %1376 = vmatpush3.bf16.msra.mxu1 %v1581_v45 }
 0x28b   :  { %v1346_v46 = vpop.f32.mrb[4].mxu1 }
 0x28c   :  { %v1347_v47 = vpop.f32.mrb[5].mxu1 }
 0x28d   :  { %v1348_v48 = vadd.f32 %v1347_v47, %v1346_v46  ;;  %v1349_v49 = vpop.f32.mrb[6].mxu1 }
 0x28e   :  { %v1350_v50 = vpop.f32.mrb[7].mxu1 }
 0x28f   :  { %v1046_v51 = vadd.f32 0.005, %v1348_v48  ;;  %v1351_v52 = vadd.f32 %v1350_v50, %v1349_v49 }
 0x291   :  { %v1049_v53 = vadd.f32 0.005, %v1351_v52  ;;  %v1052_v54 = vmax.f32 %v1046_v51, 0.0 }
 0x293   :  { %v1053_v55 = vmax.f32 %v1049_v53, 0.0 }
 0x295   :  { %v1054_v56 = vpack.c.bf16 %v1053_v55, %v1052_v54 }
 0x297   :  { %1378 = vmatmul.mubr.bf16.vlgmr.msra.gmra.mrb[8].mxu1 %v1054_v56 }
 0x36a   :  { %v1160_v58 = vpop.f32.mrb[8].mxu1 }
 0x36b   :  { %v1161_v59 = vadd.f32 %v1321_v57, %v1160_v58  ;;  %v1379_v60 = vpop.f32.mrb[9].mxu1 }
 0x36c   :  { %v1163_v61 = vpop.f32.mrb[10].mxu1 }
 0x36d   :  { %1167 = vmax.xlane.f32.xlu0 %v1161_v59  ;;  %v1380_v62 = vpop.f32.mrb[11].mxu1  ;;  %v1164_v63 = vadd.f32 %v1321_v57, %v1163_v61 }
 0x371   :  { %1169 = vmax.xlane.f32.xlu0 %v1164_v63 }
 0x3fa   :  { %v1168_v0 = vpop.xlane.xlu0 %1167 }
 0x3fb   :  { %v1171_v1 = vsub.f32 %v1161_v59, %v1168_v0 }
 0x3fd   :  { %v1173_v2 = vmul.f32 1.442695, %v1171_v1 }
 0x3fe   :  { %v1170_v3 = vpop.xlane.xlu0 %1169 }
 0x3ff   :  { %1582 = vpow2.f32 %v1173_v2  ;;  %v1172_v4 = vsub.f32 %v1164_v63, %v1170_v3 }
 0x401   :  { %v1175_v5 = vmul.f32 1.442695, %v1172_v4 }
 0x403   :  { %1584 = vpow2.f32 %v1175_v5 }
 0x409   :  { %v1583_v6 = vpop.eup %1582 }
 0x40a   :  { %1177 = vadd.xlane.f32.xlu1 %v1583_v6 }
 0x40d   :  { %v1585_v7 = vpop.eup %1584 }
 0x40e   :  { %1179 = vadd.xlane.f32.xlu1 %v1585_v7 }
 0x497   :  { %v1178_v8 = vpop.xlane.xlu1 %1177 }
 0x498   :  { %1586 = vrcp.f32 %v1178_v8 }
 0x49b   :  { %v1180_v9 = vpop.xlane.xlu1 %1179 }
 0x49c   :  { %1588 = vrcp.f32 %v1180_v9 }
 0x4a2   :  { %v1587_v10 = vpop.eup %1586 }
 0x4a3   :  { %v1183_v11 = vmul.f32 %v1587_v10, %v1583_v6 }
 0x4a5   :  { %1185 = vst [vmem:[#allocation10] sm:$0xff] %v1183_v11 }
 0x4a6   :  { %v1589_v12 = vpop.eup %1588 }
 0x4a7   :  { %v1184_v13 = vmul.f32 %v1589_v12, %v1585_v7 }
 0x4a9   :  { %1186 = vst [vmem:[#allocation10 + $0x8] sm:$0xff] %v1184_v13 }
 0x4aa   :  { %1191 = vsyncadd [#allocation4], 128  ;;  %s1721_s5 = smov [#allocation10]  }
 0x4ab   :  { %s1192_s28 = sshll.u32 %s1721_s5, 4  ;;  %s1193_s28 = int_to_ptr.vmem [resolvable:$true] %s1192_s28 }
 0x4ac   :  { %s1678_s29 = scalar_lea.vmem %s1193_s28, 128  ;;  %s1682_s30 = scalar_lea.vmem %s1193_s28, 256 }
 0x4ad   :  { %p1679_p4 = scmp.ne.s32.totalorder %s1193_s28, %s1678_s29  ;;  %p1683_p5 = scmp.lt.s32.totalorder %s1193_s28, %s1193_s28 }
 0x4ae   :  { %p1684_p6 = scmp.lt.s32.totalorder %s1682_s30, %s1678_s29 }
 0x4b0   :  { %p1685_p7 = por %p1684_p6, %p1683_p5 }
 0x4b2   :  { %p1686_p8 = pnand %p1685_p7, %p1679_p4 }
 0x4b4   :  { %1689 = shalt.err (!%p1686_p8)
}
 0x4b5   :  { %s1690_s11 = scalar_lea.hbm %s1835_s6, 128 }
 0x4b6   :  { %p1691_p9 = scmp.ne.s32.totalorder %s1835_s6, %s1690_s11  ;;  %p1694_p10 = scmp.lt.u32.totalorder %s1690_s11, %s1835_s6 }
 0x4b8   :  { %p1696_p11 = pnand %p1694_p10, %p1691_p9 }
 0x4ba   :  { %1699 = shalt.err (!%p1696_p11)
}
 0x4bb   :  { %1198 = dma.vmem_to_hbm [thread:$0]  %s1193_s28, 128, %s1835_s6, [#allocation4], %s1709_s7, %s1709_s7, %s1710_s8  }
 0x4bc   :  { %1706 = dma.done.wait [#allocation4], 256  }
 0x4bd   :  { %1707 = vsyncadd [#allocation4], 4294967040 }
 0x4be   :  { %1202 = vsyncpa [#allocation3], 1 }
 0x4bf   :  { %1203 = vsyncpa [#allocation6], 1 }
 0x4c0   :  { %1204 = vsyncpa [#allocation9], 1 }
 0x4c1   :  { %1205 = vsyncpa [#allocation4], 1 }

</bundles_post_ra>
